<compile_context>
chip_gen: v6e
topology: v6e:2x2x1
jax: 0.10.0
libtpu: 0.0.40
codegen_flags: <defaults>
</compile_context>

<pallas_src>
import functools

import jax
import jax.numpy as jnp
from jax.experimental import pallas as pl
from jax.experimental.pallas import tpu as pltpu


def _round_up(x, m):
    return (x + m - 1) // m * m


def _vmem_capacity_bytes():
    try:
        return int(pltpu.get_tpu_info().vmem_capacity_bytes)
    except Exception:
        return 64 << 20  # conservative (v7x-sized) default


# ---------------------------------------------------------------------------
# Fused single-block kernel: adj + weights VMEM-resident, Bt graphs folded per
# grid step.
# ---------------------------------------------------------------------------
def _fused_decoder_kernel(z_ref, adj_ref, w1_ref, b1_ref, w2_ref, b2_ref,
                          out_ref, h_scr):
    Bt, Np, Lp = z_ref.shape
    bf16 = jnp.bfloat16

    adj = adj_ref[...]                      # [Np, Np] bf16 (VMEM-resident)
    b1 = b1_ref[...]                        # [1, Hp]  f32
    b2 = b2_ref[...]                        # [1, Fp]  f32

    # Layer 1 weight matmul, batched over the Bt folded graphs (fills MXU M dim).
    z_flat = z_ref[...].reshape(Bt * Np, Lp)                                   # bf16
    zw = jnp.dot(z_flat, w1_ref[...], preferred_element_type=jnp.float32)      # f32
    zw = zw.astype(bf16)

    # adj matmul is per graph (adj is shared across the batch); stage the relu'd
    # hidden in a bf16 scratch so layer 2's weight matmul is batched again.
    for g in range(Bt):                     # static unroll, Bt is small
        t = jnp.dot(adj, zw[g * Np:(g + 1) * Np, :],
                    preferred_element_type=jnp.float32)                        # [Np, Hp]
        h_scr[pl.ds(g * Np, Np), :] = jnp.maximum(t + b1, 0.0).astype(bf16)

    # Layer 2.
    # TODO(synk): pick (adj@h)@W2 vs adj@(h@W2) from padded widths inside the
    # fused kernel too (currently only the tiled fallback does this).
    hw = jnp.dot(h_scr[...], w2_ref[...], preferred_element_type=jnp.float32)  # [Bt*Np, Fp]
    hw = hw.astype(bf16)
    for g in range(Bt):
        r = jnp.dot(adj, hw[g * Np:(g + 1) * Np, :],
                    preferred_element_type=jnp.float32)                        # [Np, Fp]
        out_ref[g] = jax.nn.sigmoid(r + b2).astype(out_ref.dtype)


# ---------------------------------------------------------------------------
# Tiled fallback: generic act((A @ B) + bias) with K-tile accumulation.
# Exactly one of A, B carries a leading batch axis; the other is shared.
# ---------------------------------------------------------------------------
def _bmm_epilogue_kernel(a_ref, b_ref, bias_ref, o_ref, acc_ref, *, activation):
    k = pl.program_id(3)

    @pl.when(k == 0)
    def _():
        acc_ref[...] = jnp.zeros_like(acc_ref)

    acc_ref[...] += jnp.dot(a_ref[...], b_ref[...],
                            preferred_element_type=jnp.float32)

    @pl.when(k == pl.num_programs(3) - 1)
    def _():
        r = acc_ref[...] + bias_ref[...]
        if activation == "relu":
            r = jnp.maximum(r, 0.0)
        elif activation == "sigmoid":
            r = jax.nn.sigmoid(r)
        o_ref[...] = r.astype(o_ref.dtype)


def _bmm(a, b, bias, activation, out_dtype, *, vmem_limit):
    a_batched = a.ndim == 3
    b_batched = b.ndim == 3
    assert a_batched != b_batched
    a3 = a if a_batched else a[None]
    b3 = b if b_batched else b[None]
    Bg = a3.shape[0] if a_batched else b3.shape[0]
    M, K = a3.shape[1], a3.shape[2]
    N = b3.shape[2]
    assert b3.shape[1] == K

    if bias is None:
        bias = jnp.zeros((1, N), jnp.float32)

    tm = 256 if M % 256 == 0 else 128
    tn = 256 if N % 256 == 0 else 128
    tk = 512 if K % 512 == 0 else (256 if K % 256 == 0 else 128)

    a_idx = (lambda g, i, j, k: (g, i, k)) if a_batched else (lambda g, i, j, k: (0, i, k))
    b_idx = (lambda g, i, j, k: (g, k, j)) if b_batched else (lambda g, i, j, k: (0, k, j))

    kernel = functools.partial(_bmm_epilogue_kernel, activation=activation)
    return pl.pallas_call(
        kernel,
        out_shape=jax.ShapeDtypeStruct((Bg, M, N), out_dtype),
        grid_spec=pltpu.PrefetchScalarGridSpec(
            num_scalar_prefetch=0,
            grid=(Bg, M // tm, N // tn, K // tk),
            in_specs=[
                pl.BlockSpec((None, tm, tk), a_idx),
                pl.BlockSpec((None, tk, tn), b_idx),
                pl.BlockSpec((1, tn), lambda g, i, j, k: (0, j)),
            ],
            out_specs=pl.BlockSpec((None, tm, tn), lambda g, i, j, k: (g, i, j)),
            scratch_shapes=[pltpu.VMEM((tm, tn), jnp.float32)],
        ),
        compiler_params=pltpu.CompilerParams(
            dimension_semantics=("parallel", "parallel", "parallel", "arbitrary"),
            vmem_limit_bytes=vmem_limit,
        ),
    )(a3, b3, bias)


# ---------------------------------------------------------------------------
# Wrapper: prepare (pad + cast) the call-invariant parameters ONCE, return a
# jitted decode(z).
# ---------------------------------------------------------------------------
def make_inverse_decoder(inv_adj, w1, b1, w2, b2, *,
                         out_dtype=jnp.float32, force_tiled=False):
    f32, bf16 = jnp.float32, jnp.bfloat16

    N = inv_adj.shape[0]
    L, H = w1.shape
    H2, F_out = w2.shape
    assert inv_adj.shape == (N, N) and H2 == H

    # Feature dims lane-dense (128); node dim to the bf16 sublane tile (16) for
    # small graphs, 128 for large ones so adj's lane / MXU-K dims are dense.
    Lp = _round_up(L, 128)
    Hp = _round_up(H, 128)
    Fp = _round_up(F_out, 128)
    Np_fused = _round_up(N, 16) if N < 256 else _round_up(N, 128)
    Np_tiled = _round_up(N, 128)

    vmem_cap = int(0.78 * _vmem_capacity_bytes())   # ~100 MiB v5e/v6e, ~50 MiB v7x

    # Fused-residency estimate, including f32 intermediates + bf16 recasts.
    Bt_cap = max(1, 512 // Np_fused)
    rows = Bt_cap * Np_fused
    resident = (Np_fused * Np_fused * 2 + Lp * Hp * 2 + Hp * Fp * 2 + (Hp + Fp) * 4)
    per_step = (2 * rows * Lp * 2            # z, double-buffered, bf16
                + 2 * rows * Fp * 4          # out, double-buffered, f32
                + rows * Hp * 2              # h scratch, bf16
                + rows * (Hp + Fp) * (4 + 2)  # f32 intermediates + bf16 recasts
                + Np_fused * (Hp + Fp) * 4)  # per-graph adj-matmul results
    fused_bytes = 2 * resident + per_step
    use_fused = (not force_tiled) and fused_bytes <= vmem_cap
    vmem_limit = int(min(max(int(1.4 * fused_bytes), 16 << 20), vmem_cap))

    Np = Np_fused if use_fused else Np_tiled

    # One-time padding / bf16 casting of the call-invariant parameters.  Zero
    # padding keeps the math exact: padded adj rows/cols and weight rows/cols
    # are zero, so padded lanes / padded node rows never contaminate real outputs.
    adjp = jnp.zeros((Np, Np), bf16).at[:N, :N].set(inv_adj.astype(bf16))
    w1p = jnp.zeros((Lp, Hp), bf16).at[:L, :H].set(w1.astype(bf16))
    w2p = jnp.zeros((Hp, Fp), bf16).at[:H, :F_out].set(w2.astype(bf16))
    b1p = jnp.zeros((1, Hp), f32).at[:, :H].set(jnp.reshape(b1, (1, H)).astype(f32))
    b2p = jnp.zeros((1, Fp), f32).at[:, :F_out].set(
        jnp.reshape(b2, (1, F_out)).astype(f32))

    def _fused_forward(zp, Bt):
        Bpad = zp.shape[0]
        flops = 2 * Bpad * Np * (Lp * Hp + Np * Hp + Hp * Fp + Np * Fp)
        cost = pl.CostEstimate(
            flops=int(flops),
            transcendentals=int(Bpad * Np * Fp),
            bytes_accessed=int(zp.size * 2 + adjp.size * 2 + w1p.size * 2
                               + w2p.size * 2 + (b1p.size + b2p.size) * 4
                               + Bpad * Np * Fp * jnp.dtype(out_dtype).itemsize),
        )
        const2d = lambda shape: pl.BlockSpec(shape, lambda b: (0, 0))
        return pl.pallas_call(
            _fused_decoder_kernel,
            out_shape=jax.ShapeDtypeStruct((Bpad, Np, Fp), out_dtype),
            grid_spec=pltpu.PrefetchScalarGridSpec(
                num_scalar_prefetch=0,
                grid=(Bpad // Bt,),
                in_specs=[
                    pl.BlockSpec((Bt, Np, Lp), lambda b: (b, 0, 0)),
                    const2d((Np, Np)),
                    const2d((Lp, Hp)),
                    const2d((1, Hp)),
                    const2d((Hp, Fp)),
                    const2d((1, Fp)),
                ],
                out_specs=pl.BlockSpec((Bt, Np, Fp), lambda b: (b, 0, 0)),
                scratch_shapes=[pltpu.VMEM((Bt * Np, Hp), bf16)],
            ),
            compiler_params=pltpu.CompilerParams(
                dimension_semantics=("parallel",),
                vmem_limit_bytes=vmem_limit,
            ),
            cost_estimate=cost,
        )(zp, adjp, w1p, b1p, w2p, b2p)

    def _tiled_forward(zp):
        lim = int(min(vmem_cap, 64 << 20))
        # Layer 1: put the O(N^2) adj matmul on the narrower padded width.
        if Lp <= Hp:     # (adj @ z) @ W1
            t = _bmm(adjp, zp, None, None, bf16, vmem_limit=lim)
            h = _bmm(t, w1p, b1p, "relu", bf16, vmem_limit=lim)
        else:            # adj @ (z @ W1)
            t = _bmm(zp, w1p, None, None, bf16, vmem_limit=lim)
            h = _bmm(adjp, t, b1p, "relu", bf16, vmem_limit=lim)
        # Layer 2.
        if Hp <= Fp:     # (adj @ h) @ W2
            t2 = _bmm(adjp, h, None, None, bf16, vmem_limit=lim)
            out = _bmm(t2, w2p, b2p, "sigmoid", out_dtype, vmem_limit=lim)
        else:            # adj @ (h @ W2)
            t2 = _bmm(h, w2p, None, None, bf16, vmem_limit=lim)
            out = _bmm(adjp, t2, b2p, "sigmoid", out_dtype, vmem_limit=lim)
        return out

    def decode(z):
        squeeze = z.ndim == 2
        if squeeze:
            z = z[None]
        B = z.shape[0]
        assert z.shape[1] == N and z.shape[2] == L

        if use_fused:
            Bt = max(1, min(B, Bt_cap))
            if B >= 2:   # keep >= 2 grid steps when possible (megacore / pipeline)
                Bt = max(1, min(Bt, (B + 1) // 2))
            Bpad = _round_up(B, Bt)
            zp = jnp.zeros((Bpad, Np, Lp), bf16).at[:B, :N, :L].set(z.astype(bf16))
            out = _fused_forward(zp, Bt)
        else:
            zp = jnp.zeros((B, Np, Lp), bf16).at[:, :N, :L].set(z.astype(bf16))
            out = _tiled_forward(zp)

        out = out[:B, :N, :F_out].astype(out_dtype)
        if squeeze:
            out = out[0]
        return out

    return jax.jit(decode)


if __name__ == "__main__":
    # Small shapes consistent with the module: B decoder calls, N nodes,
    # latent_dim -> nhid -> num_features.
    B, N, latent_dim, nhid, num_features = 4, 16, 8, 32, 16

    key = jax.random.PRNGKey(0)
    k_z, k_adj, k_w1, k_b1, k_w2, k_b2 = jax.random.split(key, 6)

    z = jax.random.normal(k_z, (B, N, latent_dim), dtype=jnp.float32)

    # Deterministic symmetric adjacency, then pseudo-inverse (== inverse() in the
    # PyTorch module; pinv is one-time setup done in plain JAX, not the hot path).
    a = (jax.random.uniform(k_adj, (N, N)) > 0.7).astype(jnp.float32)
    adj = jnp.maximum(a, a.T)
    adj = adj * (1.0 - jnp.eye(N)) + jnp.eye(N)
    inv_adj = jnp.linalg.pinv(adj).astype(jnp.float32)

    # Deterministic parameter init (shapes from DenseGCNConv(in, out)).
    w1 = (jax.random.normal(k_w1, (latent_dim, nhid)) * 0.1).astype(jnp.float32)
    b1 = (jax.random.normal(k_b1, (1, nhid)) * 0.1).astype(jnp.float32)
    w2 = (jax.random.normal(k_w2, (nhid, num_features)) * 0.1).astype(jnp.float32)
    b2 = (jax.random.normal(k_b2, (1, num_features)) * 0.1).astype(jnp.float32)

    # Pure-f32 JAX reference (module semantics).  The kernels feed the MXU bf16
    # operands with f32 accumulation, so the tolerance is loosened accordingly.
    h_ref = jnp.maximum(jnp.einsum("nm,bml->bnl", inv_adj, z @ w1) + b1, 0.0)
    ref = jax.nn.sigmoid(jnp.einsum("nm,bml->bnl", inv_adj, h_ref @ w2) + b2)

    # Fused path (VMEM-resident adj/weights, batch folding).
    decode = make_inverse_decoder(inv_adj, w1, b1, w2, b2)
    out = jax.block_until_ready(decode(z))
    assert out.shape == (B, N, num_features)
    err_fused = float(jnp.max(jnp.abs(out - ref)))
    assert err_fused < 3e-2, f"fused max abs err {err_fused}"

    # Tiled fallback path (used for large graphs / the v7x VMEM ceiling) — forced
    # here so it stays tested.
    decode_tiled = make_inverse_decoder(inv_adj, w1, b1, w2, b2, force_tiled=True)
    out_t = jax.block_until_ready(decode_tiled(z))
    assert out_t.shape == (B, N, num_features)
    err_tiled = float(jnp.max(jnp.abs(out_t - ref)))
    assert err_tiled < 3e-2, f"tiled max abs err {err_tiled}"

    print("KERNEL_OK")
</pallas_src>

<mosaic_0001>
module attributes {stable_mosaic.version = 11 : i64} {
  func.func @_fused_decoder_kernel(%arg0: i32, %arg1: memref<2x16x128xbf16, #tpu.memory_space<vmem>>, %arg2: memref<16x16xbf16, #tpu.memory_space<vmem>>, %arg3: memref<128x128xbf16, #tpu.memory_space<vmem>>, %arg4: memref<1x128xf32, #tpu.memory_space<vmem>>, %arg5: memref<128x128xbf16, #tpu.memory_space<vmem>>, %arg6: memref<1x128xf32, #tpu.memory_space<vmem>>, %arg7: memref<2x16x128xf32, #tpu.memory_space<vmem>>, %arg8: memref<32x128xbf16, #tpu.memory_space<vmem>>) attributes {dimension_semantics = [#tpu.dimension_semantics<parallel>], iteration_bounds = array<i64: 2>, scalar_prefetch = 0 : i64, scratch_operands = 1 : i64, tpu.core_type = #tpu.core_type<tc>, window_params = [{transform_indices = @transform_0, window_bounds = array<i64: 2, 16, 128>}, {pipeline_mode = #tpu.pipeline_mode<synchronous>, transform_indices = @transform_1, window_bounds = array<i64: 16, 16>}, {pipeline_mode = #tpu.pipeline_mode<synchronous>, transform_indices = @transform_2, window_bounds = array<i64: 128, 128>}, {pipeline_mode = #tpu.pipeline_mode<synchronous>, transform_indices = @transform_3, window_bounds = array<i64: 1, 128>}, {pipeline_mode = #tpu.pipeline_mode<synchronous>, transform_indices = @transform_4, window_bounds = array<i64: 128, 128>}, {pipeline_mode = #tpu.pipeline_mode<synchronous>, transform_indices = @transform_5, window_bounds = array<i64: 1, 128>}, {transform_indices = @transform_6, window_bounds = array<i64: 2, 16, 128>}]} {
    %c0 = arith.constant 0 : index
    %c0_0 = arith.constant 0 : index
    %0 = vector.load %arg2[%c0, %c0_0] : memref<16x16xbf16, #tpu.memory_space<vmem>>, vector<16x16xbf16>
    %c0_1 = arith.constant 0 : index
    %c0_2 = arith.constant 0 : index
    %1 = vector.load %arg4[%c0_1, %c0_2] : memref<1x128xf32, #tpu.memory_space<vmem>>, vector<1x128xf32>
    %c0_3 = arith.constant 0 : index
    %c0_4 = arith.constant 0 : index
    %2 = vector.load %arg6[%c0_3, %c0_4] : memref<1x128xf32, #tpu.memory_space<vmem>>, vector<1x128xf32>
    %c0_5 = arith.constant 0 : index
    %c0_6 = arith.constant 0 : index
    %c0_7 = arith.constant 0 : index
    %3 = vector.load %arg1[%c0_5, %c0_6, %c0_7] : memref<2x16x128xbf16, #tpu.memory_space<vmem>>, vector<2x16x128xbf16>
    %4 = vector.shape_cast %3 : vector<2x16x128xbf16> to vector<32x128xbf16>
    %c0_8 = arith.constant 0 : index
    %c0_9 = arith.constant 0 : index
    %5 = vector.load %arg3[%c0_8, %c0_9] : memref<128x128xbf16, #tpu.memory_space<vmem>>, vector<128x128xbf16>
    %cst = arith.constant dense<0.000000e+00> : vector<32x128xf32>
    %6 = tpu.matmul %4, %5, %cst {dimension_numbers = #tpu.dot_dimension_numbers<[1], [0], [0], [1], [0, 0, 1, 1], [], []>} : vector<32x128xbf16>, vector<128x128xbf16>, vector<32x128xf32> -> vector<32x128xf32>
    %7 = arith.truncf %6 : vector<32x128xf32> to vector<32x128xbf16>
    %8 = vector.extract_strided_slice %7 {offsets = [0, 0], sizes = [16, 128], strides = [1, 1]} : vector<32x128xbf16> to vector<16x128xbf16>
    %cst_10 = arith.constant dense<0.000000e+00> : vector<16x128xf32>
    %9 = tpu.matmul %0, %8, %cst_10 {dimension_numbers = #tpu.dot_dimension_numbers<[1], [0], [0], [1], [0, 0, 1, 1], [], []>} : vector<16x16xbf16>, vector<16x128xbf16>, vector<16x128xf32> -> vector<16x128xf32>
    %10 = vector.broadcast %1 : vector<1x128xf32> to vector<16x128xf32>
    %11 = arith.addf %9, %10 : vector<16x128xf32>
    %cst_11 = arith.constant 0.000000e+00 : f32
    %12 = vector.broadcast %cst_11 : f32 to vector<16x128xf32>
    %13 = arith.maximumf %11, %12 : vector<16x128xf32>
    %14 = arith.truncf %13 : vector<16x128xf32> to vector<16x128xbf16>
    %c0_12 = arith.constant 0 : index
    %c0_13 = arith.constant 0 : index
    %15 = vector.load %arg8[%c0_12, %c0_13] : memref<32x128xbf16, #tpu.memory_space<vmem>>, vector<16x128xbf16>
    tpu.vector_store %arg8[%c0_12, %c0_13], %14 {strides = array<i32>} : memref<32x128xbf16, #tpu.memory_space<vmem>>, vector<16x128xbf16>,
    %16 = vector.extract_strided_slice %7 {offsets = [16, 0], sizes = [16, 128], strides = [1, 1]} : vector<32x128xbf16> to vector<16x128xbf16>
    %cst_14 = arith.constant dense<0.000000e+00> : vector<16x128xf32>
    %17 = tpu.matmul %0, %16, %cst_14 {dimension_numbers = #tpu.dot_dimension_numbers<[1], [0], [0], [1], [0, 0, 1, 1], [], []>} : vector<16x16xbf16>, vector<16x128xbf16>, vector<16x128xf32> -> vector<16x128xf32>
    %18 = vector.broadcast %1 : vector<1x128xf32> to vector<16x128xf32>
    %19 = arith.addf %17, %18 : vector<16x128xf32>
    %cst_15 = arith.constant 0.000000e+00 : f32
    %20 = vector.broadcast %cst_15 : f32 to vector<16x128xf32>
    %21 = arith.maximumf %19, %20 : vector<16x128xf32>
    %22 = arith.truncf %21 : vector<16x128xf32> to vector<16x128xbf16>
    %c16 = arith.constant 16 : index
    %c0_16 = arith.constant 0 : index
    %23 = vector.load %arg8[%c16, %c0_16] : memref<32x128xbf16, #tpu.memory_space<vmem>>, vector<16x128xbf16>
    tpu.vector_store %arg8[%c16, %c0_16], %22 {strides = array<i32>} : memref<32x128xbf16, #tpu.memory_space<vmem>>, vector<16x128xbf16>,
    %c0_17 = arith.constant 0 : index
    %c0_18 = arith.constant 0 : index
    %24 = vector.load %arg8[%c0_17, %c0_18] : memref<32x128xbf16, #tpu.memory_space<vmem>>, vector<32x128xbf16>
    %c0_19 = arith.constant 0 : index
    %c0_20 = arith.constant 0 : index
    %25 = vector.load %arg5[%c0_19, %c0_20] : memref<128x128xbf16, #tpu.memory_space<vmem>>, vector<128x128xbf16>
    %cst_21 = arith.constant dense<0.000000e+00> : vector<32x128xf32>
    %26 = tpu.matmul %24, %25, %cst_21 {dimension_numbers = #tpu.dot_dimension_numbers<[1], [0], [0], [1], [0, 0, 1, 1], [], []>} : vector<32x128xbf16>, vector<128x128xbf16>, vector<32x128xf32> -> vector<32x128xf32>
    %27 = arith.truncf %26 : vector<32x128xf32> to vector<32x128xbf16>
    %28 = vector.extract_strided_slice %27 {offsets = [0, 0], sizes = [16, 128], strides = [1, 1]} : vector<32x128xbf16> to vector<16x128xbf16>
    %cst_22 = arith.constant dense<0.000000e+00> : vector<16x128xf32>
    %29 = tpu.matmul %0, %28, %cst_22 {dimension_numbers = #tpu.dot_dimension_numbers<[1], [0], [0], [1], [0, 0, 1, 1], [], []>} : vector<16x16xbf16>, vector<16x128xbf16>, vector<16x128xf32> -> vector<16x128xf32>
    %30 = vector.broadcast %2 : vector<1x128xf32> to vector<16x128xf32>
    %31 = arith.addf %29, %30 : vector<16x128xf32>
    %32 = arith.negf %31 : vector<16x128xf32>
    %33 = math.exp %32 : vector<16x128xf32>
    %cst_23 = arith.constant 1.000000e+00 : f32
    %34 = vector.broadcast %cst_23 : f32 to vector<16x128xf32>
    %35 = arith.addf %34, %33 : vector<16x128xf32>
    %36 = arith.divf %34, %35 : vector<16x128xf32>
    %c0_24 = arith.constant 0 : index
    %c0_25 = arith.constant 0 : index
    %c0_26 = arith.constant 0 : index
    %37 = vector.load %arg7[%c0_24, %c0_25, %c0_26] : memref<2x16x128xf32, #tpu.memory_space<vmem>>, vector<1x16x128xf32>
    %38 = vector.shape_cast %37 : vector<1x16x128xf32> to vector<16x128xf32>
    %39 = vector.shape_cast %36 : vector<16x128xf32> to vector<1x16x128xf32>
    tpu.vector_store %arg7[%c0_24, %c0_25, %c0_26], %39 {strides = array<i32>} : memref<2x16x128xf32, #tpu.memory_space<vmem>>, vector<1x16x128xf32>,
    %40 = vector.extract_strided_slice %27 {offsets = [16, 0], sizes = [16, 128], strides = [1, 1]} : vector<32x128xbf16> to vector<16x128xbf16>
    %cst_27 = arith.constant dense<0.000000e+00> : vector<16x128xf32>
    %41 = tpu.matmul %0, %40, %cst_27 {dimension_numbers = #tpu.dot_dimension_numbers<[1], [0], [0], [1], [0, 0, 1, 1], [], []>} : vector<16x16xbf16>, vector<16x128xbf16>, vector<16x128xf32> -> vector<16x128xf32>
    %42 = vector.broadcast %2 : vector<1x128xf32> to vector<16x128xf32>
    %43 = arith.addf %41, %42 : vector<16x128xf32>
    %44 = arith.negf %43 : vector<16x128xf32>
    %45 = math.exp %44 : vector<16x128xf32>
    %cst_28 = arith.constant 1.000000e+00 : f32
    %46 = vector.broadcast %cst_28 : f32 to vector<16x128xf32>
    %47 = arith.addf %46, %45 : vector<16x128xf32>
    %48 = arith.divf %46, %47 : vector<16x128xf32>
    %c1 = arith.constant 1 : index
    %c0_29 = arith.constant 0 : index
    %c0_30 = arith.constant 0 : index
    %49 = vector.load %arg7[%c1, %c0_29, %c0_30] : memref<2x16x128xf32, #tpu.memory_space<vmem>>, vector<1x16x128xf32>
    %50 = vector.shape_cast %49 : vector<1x16x128xf32> to vector<16x128xf32>
    %51 = vector.shape_cast %48 : vector<16x128xf32> to vector<1x16x128xf32>
    tpu.vector_store %arg7[%c1, %c0_29, %c0_30], %51 {strides = array<i32>} : memref<2x16x128xf32, #tpu.memory_space<vmem>>, vector<1x16x128xf32>,
    return
  }
  func.func @transform_0(%arg0: i32) -> (i32, i32, i32) {
    %c0_i32 = arith.constant 0 : i32
    %c0_i32_0 = arith.constant 0 : i32
    %c0_i32_1 = arith.constant 0 : i32
    return %arg0, %c0_i32, %c0_i32_0 : i32, i32, i32
  }
  func.func @transform_1(%arg0: i32) -> (i32, i32) {
    %c0_i32 = arith.constant 0 : i32
    %c0_i32_0 = arith.constant 0 : i32
    %c0_i32_1 = arith.constant 0 : i32
    return %c0_i32, %c0_i32_0 : i32, i32
  }
  func.func @transform_2(%arg0: i32) -> (i32, i32) {
    %c0_i32 = arith.constant 0 : i32
    %c0_i32_0 = arith.constant 0 : i32
    %c0_i32_1 = arith.constant 0 : i32
    return %c0_i32, %c0_i32_0 : i32, i32
  }
  func.func @transform_3(%arg0: i32) -> (i32, i32) {
    %c0_i32 = arith.constant 0 : i32
    %c0_i32_0 = arith.constant 0 : i32
    %c0_i32_1 = arith.constant 0 : i32
    return %c0_i32, %c0_i32_0 : i32, i32
  }
  func.func @transform_4(%arg0: i32) -> (i32, i32) {
    %c0_i32 = arith.constant 0 : i32
    %c0_i32_0 = arith.constant 0 : i32
    %c0_i32_1 = arith.constant 0 : i32
    return %c0_i32, %c0_i32_0 : i32, i32
  }
  func.func @transform_5(%arg0: i32) -> (i32, i32) {
    %c0_i32 = arith.constant 0 : i32
    %c0_i32_0 = arith.constant 0 : i32
    %c0_i32_1 = arith.constant 0 : i32
    return %c0_i32, %c0_i32_0 : i32, i32
  }
  func.func @transform_6(%arg0: i32) -> (i32, i32, i32) {
    %c0_i32 = arith.constant 0 : i32
    %c0_i32_0 = arith.constant 0 : i32
    %c0_i32_1 = arith.constant 0 : i32
    return %arg0, %c0_i32, %c0_i32_0 : i32, i32, i32
  }
}

</mosaic_0001>

<bundles_post_ra>
// kernel: decode.1
= control target key start
LH: loop header
LB: loop body
LE: loop exit
PB: predicated region body
PF: predicated region fallthrough
CT: control target
= control target key end

     0   :  { %11 = vsyncpa [#allocation4], 0  ;;  %s1361_s0 = inlined_call_operand.vmem [shape: bf16[4,16,128], index: 0, kind: input, shape index: {}]   ;;  %s1362_s1 = inlined_call_operand.vmem [shape: bf16[16,16], index: 1, kind: input, shape index: {}]   ;;  %s1363_s2 = inlined_call_operand.vmem [shape: bf16[128,128], index: 2, kind: input, shape index: {}]   ;;  %s1364_s3 = inlined_call_operand.vmem [shape: f32[1,128], index: 3, kind: input, shape index: {}]   ;;  %s1365_s4 = inlined_call_operand.vmem [shape: bf16[128,128], index: 4, kind: input, shape index: {}]   ;;  %s1366_s5 = inlined_call_operand.vmem [shape: f32[1,128], index: 5, kind: input, shape index: {}]   ;;  %s1367_s6 = inlined_call_operand.hbm [shape: f32[4,16,128], index: 6, kind: output, shape index: {}]  }
   0x1   :  { %13 = vsyncpa [#allocation4 + $0x1], 0  ;;  %s1181_s21 = smov 0   ;;  %s1183_s22 = smov 0  }
   0x2   :  { %s1185_s23 = smov 0   ;;  %s1187_s24 = smov 0  }
   0x3 LB: > { %s1202_s25 = sadd.s32 4294967295, %s1139_s24   ;;  %s838_s26 = sadd.s32 4294967294, %s1139_s24   ;;  %s1139_s24 = sphi %s1187_s24, %s1373_s24   ;;  %s1135_s23 = sphi %s1185_s23, %s1372_s23   ;;  %s1131_s22 = sphi %s1183_s22, %s1371_s22   ;;  %s1127_s21 = sphi %s1181_s21, %s1370_s21  }
   0x4   : > { %s1206_s27 = sadd.s32 1, %s1139_s24   ;;  %s157_s28 = sadd.s32 1, %s1135_s23 }
   0x5   : > { %s154_s29 = ssub.s32 %s1139_s24, %s1206_s27  ;;  %p167_p0 = scmp.ne.s32.totalorder %s1135_s23, %s1131_s22 }
   0x6   : > { %p155_p1 = scmp.eq.s32.totalorder %s154_s29, 0  ;;  %p168_p2 = scmp.eq.s32.totalorder %s1202_s25, 1 }
   0x7   : > { %p173_p3 = scmp.ne.s32.totalorder %s1131_s22, %s1127_s21  ;;  %p174_p4 = scmp.eq.s32.totalorder %s838_s26, 1 }
   0x8   : > { %s1217_s30 = scalar_select %p155_p1, %s1135_s23, %s157_s28  }
   0x9   : > { %p1219_p5 = por %p168_p2, %p167_p0  ;;  %p1223_p6 = por %p174_p4, %p173_p3 }
   0xa   : > { %p841_p7 = scmp.ge.s32.totalorder %s1139_s24, 1  ;;  %p217_p8 = scmp.lt.s32.totalorder %s1139_s24, 3 }
   0xc   : > { %p218_p9 = pnand %p841_p7, %p217_p8 }
   0xd   : > { %s843_s11 = sshll.u32 (!%p218_p9), %s1202_s25, 1  ;;  %s245_s28 = sand.u32 (!%p218_p9), 1, %s1131_s22  }
   0xe   : > { %221 = sbr.rel (%p218_p9) target bundleno = 932 (0x3a4), region = 44  ;;  %p249_p10 = scmp.lt.s32.totalorder (!%p218_p9), %s843_s11, 3 }
   0xf   : > { %s842_s29 = sshll.u32 (!%p218_p9), %s245_s28, 5  ;;  %s895_s10 = sshll.u32 (!%p218_p9), %s1202_s25, 9 }
  0x10   : > { %s247_s9 = scalar_lea.vmem (!%p218_p9), [#allocation3], %s842_s29  ;;  %s1317_s14 = scalar_lea.hbm (!%p218_p9), %s1367_s6, %s895_s10 }
  0x11   : > { %s1321_s15 = scalar_lea.sflag (!%p218_p9), [#allocation4], %s245_s28  ;;  %s1143_s25 = smov (!%p218_p9), [#allocation3]  }
  0x12   : > { %s1083_s17 = sshll.u32 (!%p218_p9), %s1143_s25, 4  ;;  %s1084_s17 = int_to_ptr.vmem [resolvable:$false] %s1083_s17 }
  0x13   : > { %v1042_v0 = vld [vmem:[%s1363_s2 + $0x38] sm:$0xff]   ;;  %v1043_v1 = vld [vmem:[%s1363_s2 + $0x30] sm:$0xff]   ;;  %s1375_s11 = smov (!%p249_p10, %s843_s11), 3  ;;  %v1044_v2 = vld [vmem:[%s1363_s2 + $0x28] sm:$0xff]   ;;  %v1141_v10 = vmov 0.0   ;;  %vm1142_vm0 = vmmov 0  }
  0x14   : > { %935 = vmatprep.subr.bf16.mxu0 %v1042_v0  ;;  %s889_s16 = sshll.u32 %s1375_s11, 3  ;;  %v1045_v3 = vld [vmem:[%s1363_s2 + $0x20] sm:$0xff]   ;;  %v1046_v5 = vld [vmem:[%s1363_s2 + $0x18] sm:$0xff]   ;;  %v1047_v6 = vld [vmem:[%s1363_s2 + $0x10] sm:$0xff]   ;;  %955 = vmatprep.subr.bf16.mxu1 %v1141_v10  ;;  %vm403_vm1 = vcmask 130048   ;;  %s776_s11 = sshll.u32 %s247_s9, 4  ;;  %s1319_s11 = int_to_ptr.vmem [resolvable:$true] %s776_s11 }
  0x15   : > { %936 = vmatpush3.bf16.msra.mxu0 %v1042_v0  ;;  %s253_s19 = scalar_lea.vmem %s1361_s0, %s889_s16  ;;  %v1048_v7 = vld [vmem:[%s1363_s2 + $0x8] sm:$0xff]   ;;  %v1049_v8 = vld [vmem:[%s1363_s2] sm:$0xff]   ;;  %957 = vmatprep.mubr.msk.bf16.mxu1 %vm1142_vm0, %v1141_v10  ;;  %v1053_v17 = vld [vmem:[%s1365_s4 + $0x38] sm:$0xff]   ;;  %s1079_s16 = scalar_lea.vmem %s1319_s11, 512 }
  0x16   : > { %937 = vmatprep.subr.bf16.mxu0 %v1043_v1  ;;  %v1050_v4 = vld [vmem:[%s253_s19] sm:$0xff]   ;;  %v1051_v9 = vld [vmem:[%s253_s19 + $0x8] sm:$0xff]   ;;  %v1054_v19 = vld [vmem:[%s1365_s4 + $0x30] sm:$0xff]   ;;  %p1080_p11 = scmp.ne.s32.totalorder %s1319_s11, %s1079_s16  ;;  %s1085_s18 = scalar_lea.vmem %s1084_s17, 1024 }
  0x17   : > { %951 = vmatprep.mubr.bf16.mxu0 %v1050_v4  ;;  %v1266_v16 = vld [vmem:[%s1362_s1] sm:$0xff]   ;;  %v1055_v20 = vld [vmem:[%s1365_s4 + $0x28] sm:$0xff]   ;;  %v1057_v22 = vld [vmem:[%s1365_s4 + $0x18] sm:$0xff]   ;;  %p1086_p0 = scmp.lt.s32.totalorder %s1319_s11, %s1084_s17  ;;  %p1087_p1 = scmp.lt.s32.totalorder %s1085_s18, %s1079_s16 }
  0x18   : > { %v1056_v21 = vld [vmem:[%s1365_s4 + $0x20] sm:$0xff]   ;;  %v1058_v23 = vld [vmem:[%s1365_s4 + $0x10] sm:$0xff]   ;;  %v1059_v24 = vld [vmem:[%s1365_s4 + $0x8] sm:$0xff]   ;;  %p1081_p12 = pnand %p1080_p11, %p1219_p5 }
  0x19   : > { %938 = vmatpush3.bf16.msra.mxu0 %v1043_v1  ;;  %v1061_v25 = vld [vmem:[%s1365_s4] sm:$0xff]   ;;  %p1088_p2 = por %p1087_p1, %p1086_p0 }
  0x1a   : > { %939 = vmatprep.subr.bf16.mxu0 %v1044_v2  ;;  %v856_v26 = vld [vmem:[%s1364_s3] ss:$0 sm:$0xff]  ;;  %p1082_p13 = pneg %p1081_p12 }
  0x1b   : > { %v874_v53 = vld [vmem:[%s1366_s5] ss:$0 sm:$0xff] }
  0x1c   : > { %p1089_p3 = pnand %p1088_p2, %p1082_p13 }
  0x1d   : > { %940 = vmatpush3.bf16.msra.mxu0 %v1044_v2 }
  0x1e   : > { %941 = vmatprep.subr.bf16.mxu0 %v1045_v3 }
  0x21   : > { %942 = vmatpush3.bf16.msra.mxu0 %v1045_v3 }
  0x22   : > { %943 = vmatprep.subr.bf16.mxu0 %v1046_v5 }
  0x25   : > { %944 = vmatpush3.bf16.msra.mxu0 %v1046_v5 }
  0x26   : > { %945 = vmatprep.subr.bf16.mxu0 %v1047_v6 }
  0x29   : > { %946 = vmatpush3.bf16.msra.mxu0 %v1047_v6 }
  0x2a   : > { %947 = vmatprep.subr.bf16.mxu0 %v1048_v7 }
  0x2d   : > { %948 = vmatpush3.bf16.msra.mxu0 %v1048_v7 }
  0x2e   : > { %949 = vmatprep.subr.bf16.mxu0 %v1049_v8 }
  0x31   : > { %950 = vmatpush3.bf16.msra.mxu0 %v1049_v8 }
  0x32   : > { %987 = vmatprep.subr.bf16.mxu0 %v1141_v10 }
  0x34   : > { %952 = vmatmul.mubr.bf16.vlgmr.msra.gmra.mxu0 %v1051_v9 }
  0x35   : > { %989 = vmatprep.mubr.msk.bf16.mxu0 %vm1142_vm0, %v1141_v10 }
  0xf4   : > { %v953_v11 = vpop.f32.mrf.mxu0 }
  0xf6   : > { %v375_v12 = vpop.f32.mrf.mxu0 }
  0xf8   : > { %v954_v13 = vpop.f32.mrf.mxu0 }
  0xf9   : > { %v391_v18 = vpack.c.bf16 %v954_v13, %v953_v11 }
  0xfa   : > { %v378_v14 = vpop.f32.mrf.mxu0 }
  0xfb   : > { %v390_v15 = vpack.c.bf16 %v378_v14, %v375_v12 }
  0xfd   : > { %956 = vmatpush3.bf16.msra.mxu1 %v390_v15 }
  0xfe   : > { %961 = vmatprep.subr.bf16.mxu1 %v1141_v10 }
 0x100   : > { %958 = vmatmul.mubr.msk.bf16.vlgmr.msra.gmra.mxu1 %vm403_vm1, %v1266_v16 }
 0x101   : > { %962 = vmatpush3.bf16.msra.mxu1 %v391_v18  ;;  %963 = vmatprep.mubr.msk.bf16.mxu1 %vm1142_vm0, %v1141_v10 }
 0x102   : > { %967 = vmatprep.subr.bf16.mxu1 %v1053_v17 }
 0x108   : > { %964 = vmatmul.mubr.msk.bf16.vlgmr.msra.gmra.mxu1 %vm403_vm1, %v1266_v16 }
 0x109   : > { %968 = vmatpush3.bf16.msra.mxu1 %v1053_v17 }
 0x10a   : > { %969 = vmatprep.subr.bf16.mxu1 %v1054_v19 }
 0x10d   : > { %970 = vmatpush3.bf16.msra.mxu1 %v1054_v19 }
 0x10e   : > { %971 = vmatprep.subr.bf16.mxu1 %v1055_v20 }
 0x111   : > { %972 = vmatpush3.bf16.msra.mxu1 %v1055_v20 }
 0x112   : > { %973 = vmatprep.subr.bf16.mxu1 %v1056_v21 }
 0x115   : > { %974 = vmatpush3.bf16.msra.mxu1 %v1056_v21 }
 0x116   : > { %975 = vmatprep.subr.bf16.mxu1 %v1057_v22 }
 0x119   : > { %976 = vmatpush3.bf16.msra.mxu1 %v1057_v22 }
 0x11a   : > { %977 = vmatprep.subr.bf16.mxu1 %v1058_v23 }
 0x11d   : > { %978 = vmatpush3.bf16.msra.mxu1 %v1058_v23 }
 0x11e   : > { %979 = vmatprep.subr.bf16.mxu1 %v1059_v24 }
 0x121   : > { %980 = vmatpush3.bf16.msra.mxu1 %v1059_v24 }
 0x122   : > { %981 = vmatprep.subr.bf16.mxu1 %v1061_v25 }
 0x125   : > { %982 = vmatpush3.bf16.msra.mxu1 %v1061_v25 }
 0x1c0   : > { %v441_v27 = vpop.f32.mrf.mxu1 }
 0x1c1   : > { %v442_v29 = vadd.f32 %v856_v26, %v441_v27 }
 0x1c2   : > { %v959_v28 = vpop.f32.mrf.mxu1 }
 0x1c3   : > { %v448_v33 = vmax.f32 %v442_v29, 0.0 }
 0x1c4   : > { %v444_v30 = vpop.f32.mrf.mxu1 }
 0x1c5   : > { %v445_v31 = vadd.f32 %v856_v26, %v444_v30 }
 0x1c6   : > { %v960_v32 = vpop.f32.mrf.mxu1 }
 0x1c7   : > { %v449_v34 = vmax.f32 %v445_v31, 0.0 }
 0x1c8   : > { %v494_v35 = vpop.f32.mrf.mxu1 }
 0x1c9   : > { %v899_v36 = vpack.c.bf16 %v449_v34, %v448_v33  ;;  %v495_v38 = vadd.f32 %v856_v26, %v494_v35 }
 0x1ca   : > { %v965_v37 = vpop.f32.mrf.mxu1 }
 0x1cb   : > { %900 = vst [vmem:[#allocation2] sm:$0xff] %v899_v36   ;;  %v501_v42 = vmax.f32 %v495_v38, 0.0 }
 0x1cc   : > { %v497_v39 = vpop.f32.mrf.mxu1 }
 0x1cd   : > { %v498_v40 = vadd.f32 %v856_v26, %v497_v39 }
 0x1ce   : > { %v966_v41 = vpop.f32.mrf.mxu1 }
 0x1cf   : > { %v502_v43 = vmax.f32 %v498_v40, 0.0 }
 0x1d1   : > { %v904_v44 = vpack.c.bf16 %v502_v43, %v501_v42 }
 0x1d2   : > { %v1060_v45 = vld [vmem:[#allocation2] sm:$0xff]  }
 0x1d3   : > { %906 = vst [vmem:[#allocation2 + $0x8] sm:$0xff] %v904_v44   ;;  %983 = vmatprep.mubr.bf16.mxu1 %v1060_v45 }
 0x1da   : > { %v1062_v46 = vld [vmem:[#allocation2 + $0x8] sm:$0xff]  }
 0x1db   : > { %984 = vmatmul.mubr.bf16.vlgmr.msra.gmra.mxu1 %v1062_v46 }
 0x29b   : > { %v985_v47 = vpop.f32.mrf.mxu1 }
 0x29d   : > { %v627_v48 = vpop.f32.mrf.mxu1 }
 0x29f   : > { %v986_v49 = vpop.f32.mrf.mxu1 }
 0x2a0   : > { %v643_v52 = vpack.c.bf16 %v986_v49, %v985_v47 }
 0x2a1   : > { %v630_v50 = vpop.f32.mrf.mxu1 }
 0x2a2   : > { %v642_v51 = vpack.c.bf16 %v630_v50, %v627_v48 }
 0x2a4   : > { %988 = vmatpush3.bf16.msra.mxu0 %v642_v51 }
 0x2a5   : > { %993 = vmatprep.subr.bf16.mxu0 %v1141_v10 }
 0x2a7   : > { %990 = vmatmul.mubr.msk.bf16.vlgmr.msra.gmra.mxu0 %vm403_vm1, %v1266_v16 }
 0x2a8   : > { %994 = vmatpush3.bf16.msra.mxu0 %v643_v52  ;;  %995 = vmatprep.mubr.msk.bf16.mxu0 %vm1142_vm0, %v1141_v10 }
 0x2af   : > { %996 = vmatmul.mubr.msk.bf16.vlgmr.msra.gmra.mxu0 %vm403_vm1, %v1266_v16 }
 0x367   : > { %v684_v54 = vpop.f32.mrf.mxu0 }
 0x368   : > { %v685_v55 = vadd.f32 %v874_v53, %v684_v54 }
 0x369   : > { %v991_v56 = vpop.f32.mrf.mxu0 }
 0x36a   : > { %v876_v57 = vmul.f32 -1.442695, %v685_v55 }
 0x36b   : > { %v687_v58 = vpop.f32.mrf.mxu0 }
 0x36c   : > { %1063 = vpow2.f32 %v876_v57  ;;  %v688_v59 = vadd.f32 %v874_v53, %v687_v58 }
 0x36d   : > { %v992_v60 = vpop.f32.mrf.mxu0 }
 0x36e   : > { %v877_v61 = vmul.f32 -1.442695, %v688_v59 }
 0x36f   : > { %v739_v62 = vpop.f32.mrf.mxu0 }
 0x370   : > { %1065 = vpow2.f32 %v877_v61  ;;  %v740_v63 = vadd.f32 %v874_v53, %v739_v62 }
 0x371   : > { %v997_v0 = vpop.f32.mrf.mxu0 }
 0x372   : > { %v879_v1 = vmul.f32 -1.442695, %v740_v63 }
 0x373   : > { %v742_v2 = vpop.f32.mrf.mxu0 }
 0x374   : > { %1067 = vpow2.f32 %v879_v1  ;;  %v743_v3 = vadd.f32 %v874_v53, %v742_v2 }
 0x375   : > { %v998_v4 = vpop.f32.mrf.mxu0 }
 0x376   : > { %v880_v5 = vmul.f32 -1.442695, %v743_v3 }
 0x378   : > { %1069 = vpow2.f32 %v880_v5 }
 0x379   : > { %v1064_v6 = vpop.eup %1063 }
 0x37a   : > { %v697_v7 = vadd.f32 1.0, %v1064_v6 }
 0x37c   : > { %1071 = vrcp.f32 %v697_v7 }
 0x37d   : > { %v1066_v8 = vpop.eup %1065 }
 0x37e   : > { %v698_v9 = vadd.f32 1.0, %v1066_v8 }
 0x380   : > { %1073 = vrcp.f32 %v698_v9 }
 0x381   : > { %v1068_v10 = vpop.eup %1067 }
 0x382   : > { %v752_v11 = vadd.f32 1.0, %v1068_v10 }
 0x384   : > { %1075 = vrcp.f32 %v752_v11 }
 0x385   : > { %v1070_v12 = vpop.eup %1069 }
 0x386   : > { %v753_v13 = vadd.f32 1.0, %v1070_v12 }
 0x388   : > { %1077 = vrcp.f32 %v753_v13 }
 0x389   : > { %v1072_v14 = vpop.eup %1071 }
 0x38a   : > { %703 = vst [vmem:[%s247_s9] sm:$0xff] %v1072_v14 }
 0x38d   : > { %v1074_v15 = vpop.eup %1073 }
 0x38e   : > { %704 = vst [vmem:[%s247_s9 + $0x8] sm:$0xff] %v1074_v15 }
 0x391   : > { %v1076_v16 = vpop.eup %1075 }
 0x392   : > { %881 = vst [vmem:[%s247_s9 + $0x10] sm:$0xff] %v1076_v16 }
 0x395   : > { %v1078_v17 = vpop.eup %1077 }
 0x396   : > { %882 = vst [vmem:[%s247_s9 + $0x18] sm:$0xff] %v1078_v17 }
 0x397   : > { %1092 = shalt.err (!%p1089_p3)
}
 0x398   : > { %s1093_s19 = scalar_lea.hbm %s1317_s14, 512  ;;  %s1097_s28 = scalar_lea.hbm %s1367_s6, 1024 }
 0x399   : > { %p1094_p4 = scmp.ne.s32.totalorder %s1317_s14, %s1093_s19  ;;  %p1098_p9 = scmp.lt.s32.totalorder %s1317_s14, %s1367_s6 }
 0x39a   : > { %p1099_p10 = scmp.lt.s32.totalorder %s1097_s28, %s1093_s19 }
 0x39b   : > { %p1095_p7 = pnand %p1094_p4, %p1219_p5 }
 0x39c   : > { %p1100_p11 = por %p1099_p10, %p1098_p9 }
 0x39d   : > { %p1096_p8 = pneg %p1095_p7 }
 0x39f   : > { %p1101_p12 = pnand %p1100_p11, %p1096_p8 }
 0x3a1   : > { %1104 = shalt.err (!%p1101_p12)
}
 0x3a2   : > { %s1144_s10 = smov 128   ;;  %s1145_s12 = smov 8  }
 0x3a3   : > { %999 = dma.vmem_to_hbm [thread:$0]  (%p1219_p5), %s1319_s11, 512, %s1317_s14, %s1321_s15, %s1144_s10, %s1144_s10, %s1145_s12  }
 0x3a4 PF: > { %p1005_p13 = scmp.ge.s32.totalorder %s1139_s24, 2  ;;  %s791_s13 = sand.u32 1, %s1127_s21  }
 0x3a5   : > { %s792_s16 = scalar_lea.sflag [#allocation4], %s791_s13 }
 0x3a6   : > { %p1002_p0 = pnand %p1005_p13, %p1223_p6 }
 0x3a8   : > { %p1003_p1 = pneg %p1002_p0 }
 0x3aa   : > { %1122 = dma.done.wait (%p1003_p1), %s792_s16, 512  }
 0x3ab   : > { %1124 = vsyncadd (%p1003_p1), %s792_s16, 4294966784  ;;  %p16_p2 = scmp.ge.s32.totalorder %s1206_s27, 4   ;;  %s1370_s21 = smov %s1131_s22 }
 0x3ac   : > { %s1371_s22 = smov %s1135_s23  ;;  %s1372_s23 = smov %s1217_s30 }
 0x3ad   : > { %s1373_s24 = smov %s1206_s27  ;;  %18 = sbr.rel (!%p16_p2) target bundleno = 3 (0x3), region = 80 }
 0x3b2   :  { %797 = vsyncpa [#allocation4], 1 }
 0x3b3   :  { %799 = vsyncpa [#allocation4 + $0x1], 1 }

</bundles_post_ra>
